<compile_context>
chip_gen: v6e
topology: v6e:2x2x1
jax: 0.10.0
libtpu: 0.0.40
codegen_flags: <defaults>
</compile_context>

<pallas_src>
import numpy as np
import jax
import jax.numpy as jnp
from jax import lax
from jax.experimental import pallas as pl
from jax.experimental.pallas import tpu as pltpu

EPS = 1e-5   # nn.BatchNorm3d default


def _tap_masks(D, H, W, K, P):
    """(K*K, D*H*W) f32 boundary masks for the (K, K, 1) conv taps."""
    dd, hh, _ = np.meshgrid(np.arange(D), np.arange(H), np.arange(W),
                            indexing="ij")
    dd, hh = dd.ravel(), hh.ravel()
    rows = []
    for i in range(K):
        for j in range(K):
            di, dj = i - P, j - P
            rows.append((dd + di >= 0) & (dd + di < D)
                        & (hh + dj >= 0) & (hh + dj < H))
    return jnp.asarray(np.stack(rows).astype(np.float32))


def _make_kernel(N, C_in, C_out, D, H, W, K, P):
    HW, DHW = H * W, D * H * W
    R_in, R_out = N * C_in, N * C_out
    inv_count = 1.0 / float(N * DHW)           # BN count per channel

    def kernel(x_ref, wbd_ref, msk_ref, g_ref, b_ref, o_ref, patch_ref):
        x = x_ref[...]                                         # (R_in, DHW)

        # ---- conv taps: roll (XLU) + boundary mask -> im2col slab in VMEM.
        # Rolling the flattened (D,H,W) axis wraps within each row; the mask
        # zeroes exactly the out-of-range tap positions.
        for i in range(K):
            for j in range(K):
                t = i * K + j
                off = (i - P) * HW + (j - P) * W
                shifted = pltpu.roll(x, (-off) % DHW, 1) if off else x
                patch_ref[t * R_in:(t + 1) * R_in, :] = (
                    shifted * msk_ref[t:t + 1, :])

        # ---- all multiply-adds on the MXU. wbd is block-diagonal over the
        # batch, so packed batch rows never mix in the contraction.
        y = jnp.dot(wbd_ref[...], patch_ref[...],
                    preferred_element_type=jnp.float32)        # (R_out, DHW)

        # ---- BatchNorm3d training statistics (two-pass variance).
        # Rows r = n*C_out + co of the same channel are C_out apart, so a
        # sublane roll-accumulate puts the per-channel batch sum in every row.
        def group_sum(v):                                      # -> (R_out, 1)
            tot = v
            for s in range(1, N):
                tot = tot + pltpu.roll(v, s * C_out, 0)
            return jnp.sum(tot, axis=1, keepdims=True)

        mu = group_sum(y) * inv_count
        cen = y - mu
        var = group_sum(cen * cen) * inv_count                 # biased (training)
        scale = g_ref[...] * lax.rsqrt(var + EPS)

        # ---- normalize + affine + ReLU: one lane-dense unmasked store.
        o_ref[...] = jnp.maximum(cen * scale + b_ref[...], 0.0)

    return kernel


def conv2d_bn_relu(x, weight, gamma, beta, *, padding, stride=1):
    """Forward of the Conv2D module.  x: (N, C_in, D, H, W) float32."""
    # TODO(synk): stride > 1 not implemented (the test path uses stride=1).
    assert stride == 1
    N, C_in, D, H, W = x.shape
    C_out, C_in2, K, K2, K3 = weight.shape
    assert C_in2 == C_in and K2 == K and K3 == 1
    P = padding
    DHW = D * H * W
    KK = K * K
    R_in, R_out = N * C_in, N * C_out

    # Batch packed into sublanes: row r = n*C_in + ci (pure row-major reshape).
    x_r = x.reshape(R_in, DHW).astype(jnp.float32)

    # Block-diagonal (over the batch) im2col weight matrix:
    #   wbd[n*C_out+co, t*R_in + n*C_in + ci] = weight[co, ci, i, j, 0], t=i*K+j
    w_kk = weight.reshape(C_out, C_in, KK).astype(jnp.float32)
    wbd = jnp.einsum("ab,oct->aotbc", jnp.eye(N, dtype=jnp.float32), w_kk)
    wbd = wbd.reshape(R_out, KK * R_in)

    msk = _tap_masks(D, H, W, K, P)                            # (KK, DHW)
    gcol = jnp.tile(gamma.astype(jnp.float32), (N,)).reshape(R_out, 1)
    bcol = jnp.tile(beta.astype(jnp.float32), (N,)).reshape(R_out, 1)

    out = pl.pallas_call(
        _make_kernel(N, C_in, C_out, D, H, W, K, P),
        grid=(1,),
        out_shape=jax.ShapeDtypeStruct((R_out, DHW), jnp.float32),
        in_specs=[
            pl.BlockSpec((R_in, DHW), lambda i: (0, 0)),
            pl.BlockSpec((R_out, KK * R_in), lambda i: (0, 0)),
            pl.BlockSpec((KK, DHW), lambda i: (0, 0)),
            pl.BlockSpec((R_out, 1), lambda i: (0, 0)),
            pl.BlockSpec((R_out, 1), lambda i: (0, 0)),
        ],
        out_specs=pl.BlockSpec((R_out, DHW), lambda i: (0, 0)),
        scratch_shapes=[pltpu.VMEM((KK * R_in, DHW), jnp.float32)],
    )(x_r, wbd, msk, gcol, bcol)

    return out.reshape(N, C_out, D, H, W)


def _reference(x, weight, gamma, beta, padding):
    """Pure-JAX reference: Conv3d -> BatchNorm3d (batch stats) -> ReLU."""
    P = padding
    y = lax.conv_general_dilated(
        x, weight, window_strides=(1, 1, 1),
        padding=[(P, P), (P, P), (0, 0)],
        dimension_numbers=("NCDHW", "OIDHW", "NCDHW"))
    mu = jnp.mean(y, axis=(0, 2, 3, 4), keepdims=True)
    var = jnp.mean((y - mu) ** 2, axis=(0, 2, 3, 4), keepdims=True)
    yn = ((y - mu) * lax.rsqrt(var + EPS) * gamma.reshape(1, -1, 1, 1, 1)
          + beta.reshape(1, -1, 1, 1, 1))
    return jnp.maximum(yn, 0.0)


if __name__ == "__main__":
    key = jax.random.PRNGKey(0)
    k1, k2, k3, k4 = jax.random.split(key, 4)

    # N*C_in = 8 (full sublanes), D*H*W = 512 (lane-dense multiple of 128).
    N, C_in, C_out, D, H, W = 2, 4, 4, 8, 8, 8
    K, P = 3, 1

    # Quantize x / weight to bf16-representable values so the MXU contraction
    # and the XLA reference conv are bit-comparable regardless of matmul pass.
    x = jax.random.normal(k1, (N, C_in, D, H, W), dtype=jnp.float32)
    x = x.astype(jnp.bfloat16).astype(jnp.float32)
    weight = 0.1 * jax.random.normal(k2, (C_out, C_in, K, K, 1),
                                     dtype=jnp.float32)
    weight = weight.astype(jnp.bfloat16).astype(jnp.float32)
    gamma = 1.0 + 0.1 * jax.random.normal(k3, (C_out,), dtype=jnp.float32)
    beta = 0.05 * jax.random.normal(k4, (C_out,), dtype=jnp.float32)

    out = conv2d_bn_relu(x, weight, gamma, beta, padding=P, stride=1)
    out = jax.block_until_ready(out)

    ref = _reference(x, weight, gamma, beta, P)
    assert out.shape == (N, C_out, D, H, W)
    err = float(jnp.max(jnp.abs(out - ref)))
    assert jnp.allclose(out, ref, rtol=1e-3, atol=1e-3), err

    print("KERNEL_OK")
</pallas_src>

<mosaic_0001>
module attributes {stable_mosaic.version = 11 : i64} {
  func.func @kernel(%arg0: i32, %arg1: memref<8x512xf32, #tpu.memory_space<vmem>>, %arg2: memref<8x72xf32, #tpu.memory_space<vmem>>, %arg3: memref<9x512xf32, #tpu.memory_space<vmem>>, %arg4: memref<8x1xf32, #tpu.memory_space<vmem>>, %arg5: memref<8x1xf32, #tpu.memory_space<vmem>>, %arg6: memref<8x512xf32, #tpu.memory_space<vmem>>, %arg7: memref<72x512xf32, #tpu.memory_space<vmem>>) attributes {dimension_semantics = [#tpu.dimension_semantics<arbitrary>], iteration_bounds = array<i64: 1>, scalar_prefetch = 0 : i64, scratch_operands = 1 : i64, tpu.core_type = #tpu.core_type<tc>, window_params = [{pipeline_mode = #tpu.pipeline_mode<synchronous>, transform_indices = @transform_0, window_bounds = array<i64: 8, 512>}, {pipeline_mode = #tpu.pipeline_mode<synchronous>, transform_indices = @transform_1, window_bounds = array<i64: 8, 72>}, {pipeline_mode = #tpu.pipeline_mode<synchronous>, transform_indices = @transform_2, window_bounds = array<i64: 9, 512>}, {pipeline_mode = #tpu.pipeline_mode<synchronous>, transform_indices = @transform_3, window_bounds = array<i64: 8, 1>}, {pipeline_mode = #tpu.pipeline_mode<synchronous>, transform_indices = @transform_4, window_bounds = array<i64: 8, 1>}, {pipeline_mode = #tpu.pipeline_mode<synchronous>, transform_indices = @transform_5, window_bounds = array<i64: 8, 512>}]} {
    %c0 = arith.constant 0 : index
    %c0_0 = arith.constant 0 : index
    %0 = vector.load %arg1[%c0, %c0_0] : memref<8x512xf32, #tpu.memory_space<vmem>>, vector<8x512xf32>
    %c72_i32 = arith.constant 72 : i32
    %1 = tpu.dynamic_rotate %0 by %c72_i32 dim 1 : vector<8x512xf32>, i32 -> vector<8x512xf32>
    %c0_1 = arith.constant 0 : index
    %c0_2 = arith.constant 0 : index
    %2 = vector.load %arg3[%c0_1, %c0_2] : memref<9x512xf32, #tpu.memory_space<vmem>>, vector<1x512xf32>
    %3 = vector.broadcast %2 : vector<1x512xf32> to vector<8x512xf32>
    %4 = arith.mulf %1, %3 : vector<8x512xf32>
    %c0_3 = arith.constant 0 : index
    %c0_4 = arith.constant 0 : index
    %5 = vector.load %arg7[%c0_3, %c0_4] : memref<72x512xf32, #tpu.memory_space<vmem>>, vector<8x512xf32>
    tpu.vector_store %arg7[%c0_3, %c0_4], %4 {strides = array<i32>} : memref<72x512xf32, #tpu.memory_space<vmem>>, vector<8x512xf32>,
    %c64_i32 = arith.constant 64 : i32
    %6 = tpu.dynamic_rotate %0 by %c64_i32 dim 1 : vector<8x512xf32>, i32 -> vector<8x512xf32>
    %c1 = arith.constant 1 : index
    %c0_5 = arith.constant 0 : index
    %7 = vector.load %arg3[%c1, %c0_5] : memref<9x512xf32, #tpu.memory_space<vmem>>, vector<1x512xf32>
    %8 = vector.broadcast %7 : vector<1x512xf32> to vector<8x512xf32>
    %9 = arith.mulf %6, %8 : vector<8x512xf32>
    %c8 = arith.constant 8 : index
    %c0_6 = arith.constant 0 : index
    %10 = vector.load %arg7[%c8, %c0_6] : memref<72x512xf32, #tpu.memory_space<vmem>>, vector<8x512xf32>
    tpu.vector_store %arg7[%c8, %c0_6], %9 {strides = array<i32>} : memref<72x512xf32, #tpu.memory_space<vmem>>, vector<8x512xf32>,
    %c56_i32 = arith.constant 56 : i32
    %11 = tpu.dynamic_rotate %0 by %c56_i32 dim 1 : vector<8x512xf32>, i32 -> vector<8x512xf32>
    %c2 = arith.constant 2 : index
    %c0_7 = arith.constant 0 : index
    %12 = vector.load %arg3[%c2, %c0_7] : memref<9x512xf32, #tpu.memory_space<vmem>>, vector<1x512xf32>
    %13 = vector.broadcast %12 : vector<1x512xf32> to vector<8x512xf32>
    %14 = arith.mulf %11, %13 : vector<8x512xf32>
    %c16 = arith.constant 16 : index
    %c0_8 = arith.constant 0 : index
    %15 = vector.load %arg7[%c16, %c0_8] : memref<72x512xf32, #tpu.memory_space<vmem>>, vector<8x512xf32>
    tpu.vector_store %arg7[%c16, %c0_8], %14 {strides = array<i32>} : memref<72x512xf32, #tpu.memory_space<vmem>>, vector<8x512xf32>,
    %c8_i32 = arith.constant 8 : i32
    %16 = tpu.dynamic_rotate %0 by %c8_i32 dim 1 : vector<8x512xf32>, i32 -> vector<8x512xf32>
    %c3 = arith.constant 3 : index
    %c0_9 = arith.constant 0 : index
    %17 = vector.load %arg3[%c3, %c0_9] : memref<9x512xf32, #tpu.memory_space<vmem>>, vector<1x512xf32>
    %18 = vector.broadcast %17 : vector<1x512xf32> to vector<8x512xf32>
    %19 = arith.mulf %16, %18 : vector<8x512xf32>
    %c24 = arith.constant 24 : index
    %c0_10 = arith.constant 0 : index
    %20 = vector.load %arg7[%c24, %c0_10] : memref<72x512xf32, #tpu.memory_space<vmem>>, vector<8x512xf32>
    tpu.vector_store %arg7[%c24, %c0_10], %19 {strides = array<i32>} : memref<72x512xf32, #tpu.memory_space<vmem>>, vector<8x512xf32>,
    %c4 = arith.constant 4 : index
    %c0_11 = arith.constant 0 : index
    %21 = vector.load %arg3[%c4, %c0_11] : memref<9x512xf32, #tpu.memory_space<vmem>>, vector<1x512xf32>
    %22 = vector.broadcast %21 : vector<1x512xf32> to vector<8x512xf32>
    %23 = arith.mulf %0, %22 : vector<8x512xf32>
    %c32 = arith.constant 32 : index
    %c0_12 = arith.constant 0 : index
    %24 = vector.load %arg7[%c32, %c0_12] : memref<72x512xf32, #tpu.memory_space<vmem>>, vector<8x512xf32>
    tpu.vector_store %arg7[%c32, %c0_12], %23 {strides = array<i32>} : memref<72x512xf32, #tpu.memory_space<vmem>>, vector<8x512xf32>,
    %c504_i32 = arith.constant 504 : i32
    %25 = tpu.dynamic_rotate %0 by %c504_i32 dim 1 : vector<8x512xf32>, i32 -> vector<8x512xf32>
    %c5 = arith.constant 5 : index
    %c0_13 = arith.constant 0 : index
    %26 = vector.load %arg3[%c5, %c0_13] : memref<9x512xf32, #tpu.memory_space<vmem>>, vector<1x512xf32>
    %27 = vector.broadcast %26 : vector<1x512xf32> to vector<8x512xf32>
    %28 = arith.mulf %25, %27 : vector<8x512xf32>
    %c40 = arith.constant 40 : index
    %c0_14 = arith.constant 0 : index
    %29 = vector.load %arg7[%c40, %c0_14] : memref<72x512xf32, #tpu.memory_space<vmem>>, vector<8x512xf32>
    tpu.vector_store %arg7[%c40, %c0_14], %28 {strides = array<i32>} : memref<72x512xf32, #tpu.memory_space<vmem>>, vector<8x512xf32>,
    %c456_i32 = arith.constant 456 : i32
    %30 = tpu.dynamic_rotate %0 by %c456_i32 dim 1 : vector<8x512xf32>, i32 -> vector<8x512xf32>
    %c6 = arith.constant 6 : index
    %c0_15 = arith.constant 0 : index
    %31 = vector.load %arg3[%c6, %c0_15] : memref<9x512xf32, #tpu.memory_space<vmem>>, vector<1x512xf32>
    %32 = vector.broadcast %31 : vector<1x512xf32> to vector<8x512xf32>
    %33 = arith.mulf %30, %32 : vector<8x512xf32>
    %c48 = arith.constant 48 : index
    %c0_16 = arith.constant 0 : index
    %34 = vector.load %arg7[%c48, %c0_16] : memref<72x512xf32, #tpu.memory_space<vmem>>, vector<8x512xf32>
    tpu.vector_store %arg7[%c48, %c0_16], %33 {strides = array<i32>} : memref<72x512xf32, #tpu.memory_space<vmem>>, vector<8x512xf32>,
    %c448_i32 = arith.constant 448 : i32
    %35 = tpu.dynamic_rotate %0 by %c448_i32 dim 1 : vector<8x512xf32>, i32 -> vector<8x512xf32>
    %c7 = arith.constant 7 : index
    %c0_17 = arith.constant 0 : index
    %36 = vector.load %arg3[%c7, %c0_17] : memref<9x512xf32, #tpu.memory_space<vmem>>, vector<1x512xf32>
    %37 = vector.broadcast %36 : vector<1x512xf32> to vector<8x512xf32>
    %38 = arith.mulf %35, %37 : vector<8x512xf32>
    %c56 = arith.constant 56 : index
    %c0_18 = arith.constant 0 : index
    %39 = vector.load %arg7[%c56, %c0_18] : memref<72x512xf32, #tpu.memory_space<vmem>>, vector<8x512xf32>
    tpu.vector_store %arg7[%c56, %c0_18], %38 {strides = array<i32>} : memref<72x512xf32, #tpu.memory_space<vmem>>, vector<8x512xf32>,
    %c440_i32 = arith.constant 440 : i32
    %40 = tpu.dynamic_rotate %0 by %c440_i32 dim 1 : vector<8x512xf32>, i32 -> vector<8x512xf32>
    %c8_19 = arith.constant 8 : index
    %c0_20 = arith.constant 0 : index
    %41 = vector.load %arg3[%c8_19, %c0_20] : memref<9x512xf32, #tpu.memory_space<vmem>>, vector<1x512xf32>
    %42 = vector.broadcast %41 : vector<1x512xf32> to vector<8x512xf32>
    %43 = arith.mulf %40, %42 : vector<8x512xf32>
    %c64 = arith.constant 64 : index
    %c0_21 = arith.constant 0 : index
    %44 = vector.load %arg7[%c64, %c0_21] : memref<72x512xf32, #tpu.memory_space<vmem>>, vector<8x512xf32>
    tpu.vector_store %arg7[%c64, %c0_21], %43 {strides = array<i32>} : memref<72x512xf32, #tpu.memory_space<vmem>>, vector<8x512xf32>,
    %c0_22 = arith.constant 0 : index
    %c0_23 = arith.constant 0 : index
    %45 = vector.load %arg2[%c0_22, %c0_23] : memref<8x72xf32, #tpu.memory_space<vmem>>, vector<8x72xf32>
    %c0_24 = arith.constant 0 : index
    %c0_25 = arith.constant 0 : index
    %46 = vector.load %arg7[%c0_24, %c0_25] : memref<72x512xf32, #tpu.memory_space<vmem>>, vector<72x512xf32>
    %cst = arith.constant dense<0.000000e+00> : vector<8x512xf32>
    %47 = tpu.matmul %45, %46, %cst {dimension_numbers = #tpu.dot_dimension_numbers<[1], [0], [0], [1], [0, 0, 1, 1], [], []>} : vector<8x72xf32>, vector<72x512xf32>, vector<8x512xf32> -> vector<8x512xf32>
    %c4_i32 = arith.constant 4 : i32
    %48 = tpu.dynamic_rotate %47 by %c4_i32 dim 0 : vector<8x512xf32>, i32 -> vector<8x512xf32>
    %49 = arith.addf %47, %48 : vector<8x512xf32>
    %cst_26 = arith.constant dense<0.000000e+00> : vector<8xf32>
    %50 = vector.multi_reduction <add>, %49, %cst_26 [1] : vector<8x512xf32> to vector<8xf32>
    %51 = vector.shape_cast %50 : vector<8xf32> to vector<8x1xf32>
    %cst_27 = arith.constant 9.765625E-4 : f32
    %52 = vector.broadcast %cst_27 : f32 to vector<8x1xf32>
    %53 = arith.mulf %51, %52 : vector<8x1xf32>
    %54 = vector.broadcast %53 : vector<8x1xf32> to vector<8x512xf32>
    %55 = arith.subf %47, %54 : vector<8x512xf32>
    %56 = arith.mulf %55, %55 : vector<8x512xf32>
    %c4_i32_28 = arith.constant 4 : i32
    %57 = tpu.dynamic_rotate %56 by %c4_i32_28 dim 0 : vector<8x512xf32>, i32 -> vector<8x512xf32>
    %58 = arith.addf %56, %57 : vector<8x512xf32>
    %cst_29 = arith.constant dense<0.000000e+00> : vector<8xf32>
    %59 = vector.multi_reduction <add>, %58, %cst_29 [1] : vector<8x512xf32> to vector<8xf32>
    %60 = vector.shape_cast %59 : vector<8xf32> to vector<8x1xf32>
    %cst_30 = arith.constant 9.765625E-4 : f32
    %61 = vector.broadcast %cst_30 : f32 to vector<8x1xf32>
    %62 = arith.mulf %60, %61 : vector<8x1xf32>
    %c0_31 = arith.constant 0 : index
    %c0_32 = arith.constant 0 : index
    %63 = vector.load %arg4[%c0_31, %c0_32] : memref<8x1xf32, #tpu.memory_space<vmem>>, vector<8x1xf32>
    %cst_33 = arith.constant 9.99999974E-6 : f32
    %64 = vector.broadcast %cst_33 : f32 to vector<8x1xf32>
    %65 = arith.addf %62, %64 : vector<8x1xf32>
    %66 = math.rsqrt %65 : vector<8x1xf32>
    %67 = arith.mulf %63, %66 : vector<8x1xf32>
    %68 = vector.broadcast %67 : vector<8x1xf32> to vector<8x512xf32>
    %69 = arith.mulf %55, %68 : vector<8x512xf32>
    %c0_34 = arith.constant 0 : index
    %c0_35 = arith.constant 0 : index
    %70 = vector.load %arg5[%c0_34, %c0_35] : memref<8x1xf32, #tpu.memory_space<vmem>>, vector<8x1xf32>
    %71 = vector.broadcast %70 : vector<8x1xf32> to vector<8x512xf32>
    %72 = arith.addf %69, %71 : vector<8x512xf32>
    %cst_36 = arith.constant 0.000000e+00 : f32
    %73 = vector.broadcast %cst_36 : f32 to vector<8x512xf32>
    %74 = arith.maximumf %72, %73 : vector<8x512xf32>
    %c0_37 = arith.constant 0 : index
    %c0_38 = arith.constant 0 : index
    %75 = vector.load %arg6[%c0_37, %c0_38] : memref<8x512xf32, #tpu.memory_space<vmem>>, vector<8x512xf32>
    tpu.vector_store %arg6[%c0_37, %c0_38], %74 {strides = array<i32>} : memref<8x512xf32, #tpu.memory_space<vmem>>, vector<8x512xf32>,
    return
  }
  func.func @transform_0(%arg0: i32) -> (i32, i32) {
    %c0_i32 = arith.constant 0 : i32
    %c0_i32_0 = arith.constant 0 : i32
    %c0_i32_1 = arith.constant 0 : i32
    return %c0_i32, %c0_i32_0 : i32, i32
  }
  func.func @transform_1(%arg0: i32) -> (i32, i32) {
    %c0_i32 = arith.constant 0 : i32
    %c0_i32_0 = arith.constant 0 : i32
    %c0_i32_1 = arith.constant 0 : i32
    return %c0_i32, %c0_i32_0 : i32, i32
  }
  func.func @transform_2(%arg0: i32) -> (i32, i32) {
    %c0_i32 = arith.constant 0 : i32
    %c0_i32_0 = arith.constant 0 : i32
    %c0_i32_1 = arith.constant 0 : i32
    return %c0_i32, %c0_i32_0 : i32, i32
  }
  func.func @transform_3(%arg0: i32) -> (i32, i32) {
    %c0_i32 = arith.constant 0 : i32
    %c0_i32_0 = arith.constant 0 : i32
    %c0_i32_1 = arith.constant 0 : i32
    return %c0_i32, %c0_i32_0 : i32, i32
  }
  func.func @transform_4(%arg0: i32) -> (i32, i32) {
    %c0_i32 = arith.constant 0 : i32
    %c0_i32_0 = arith.constant 0 : i32
    %c0_i32_1 = arith.constant 0 : i32
    return %c0_i32, %c0_i32_0 : i32, i32
  }
  func.func @transform_5(%arg0: i32) -> (i32, i32) {
    %c0_i32 = arith.constant 0 : i32
    %c0_i32_0 = arith.constant 0 : i32
    %c0_i32_1 = arith.constant 0 : i32
    return %c0_i32, %c0_i32_0 : i32, i32
  }
}

</mosaic_0001>

<bundles_post_ra>
// kernel: tpu_custom_call.1
= control target key start
LH: loop header
LB: loop body
LE: loop exit
PB: predicated region body
PF: predicated region fallthrough
CT: control target
= control target key end

     0   :  { %10 = vsyncpa [#allocation4], 0  ;;  %s989_s0 = inlined_call_operand.hbm [shape: f32[8,512], index: 0, kind: input, shape index: {}]   ;;  %s990_s1 = inlined_call_operand.vmem [shape: f32[8,72], index: 1, kind: input, shape index: {}]   ;;  %s991_s2 = inlined_call_operand.hbm [shape: f32[9,512], index: 2, kind: input, shape index: {}]   ;;  %s992_s3 = inlined_call_operand.vmem [shape: f32[8,1], index: 3, kind: input, shape index: {}]   ;;  %s993_s4 = inlined_call_operand.vmem [shape: f32[8,1], index: 4, kind: input, shape index: {}]   ;;  %s994_s5 = inlined_call_operand.hbm [shape: f32[8,512], index: 5, kind: output, shape index: {}]  }
   0x1   :  { %11 = vsyncpa [#allocation7], 0 }
   0x2   :  { %12 = vsyncpa [#allocation5], 0  ;;  %s746_s18 = smov [#allocation3]   ;;  %s747_s20 = smov [#allocation6]  }
   0x3   :  { %s19_s19 = sshll.u32 %s746_s18, 4  ;;  %s30_s21 = sshll.u32 %s747_s20, 4  ;;  %s20_s19 = int_to_ptr.vmem [resolvable:$true] %s19_s19  ;;  %s31_s21 = int_to_ptr.vmem [resolvable:$true] %s30_s21 }
   0x4   :  { %s688_s22 = scalar_lea.vmem %s20_s19, 512  ;;  %p693_p1 = scmp.lt.s32.totalorder %s20_s19, %s20_s19 }
   0x5   :  { %p689_p0 = scmp.ne.s32.totalorder %s20_s19, %s688_s22  ;;  %p694_p2 = scmp.lt.s32.totalorder %s688_s22, %s688_s22 }
   0x7   :  { %p695_p3 = por %p694_p2, %p693_p1 }
   0x9   :  { %p696_p4 = pnand %p695_p3, %p689_p0 }
   0xb   :  { %699 = shalt.err (!%p696_p4)
}
   0xc   :  { %22 = dma.hbm_to_vmem [thread:$0]  %s989_s0, 512, %s20_s19, [#allocation4]  }
   0xd   :  { %s708_s25 = scalar_lea.vmem %s31_s21, 1024  ;;  %p713_p6 = scmp.lt.s32.totalorder %s31_s21, %s31_s21 }
   0xe   :  { %p709_p5 = scmp.ne.s32.totalorder %s31_s21, %s708_s25  ;;  %p714_p7 = scmp.lt.s32.totalorder %s708_s25, %s708_s25 }
  0x10   :  { %p715_p8 = por %p714_p7, %p713_p6 }
  0x12   :  { %p716_p9 = pnand %p715_p8, %p709_p5 }
  0x14   :  { %719 = shalt.err (!%p716_p9)
}
  0x15   :  { %s748_s26 = smov 512   ;;  %s749_s27 = smov 32  }
  0x16   :  { %36 = dma.hbm_to_vmem [thread:$0]  %s991_s2, 1024, %s31_s21, [#allocation7], %s748_s26, %s748_s26, %s749_s27  }
  0x17   :  { %740 = dma.done.wait [#allocation4], 512  }
  0x18   :  { %741 = vsyncadd [#allocation4], 4294966784 }
  0x19   :  { %742 = dma.done.wait [#allocation7], 1024  }
  0x1a   :  { %743 = vsyncadd [#allocation7], 4294966272  ;;  %v794_v0 = vld [vmem:[#allocation3 + $0x8] sm:$0xff]  ;;  %v796_v1 = vld [vmem:[#allocation3] sm:$0xff]  ;;  %s750_s0 = smov 56   ;;  %s751_s30 = smov 64   ;;  %v59_v5 = vlaneseq }
  0x1b   :  { %142 = vrot.lane.b32.xlu0 %v794_v0, %s750_s0  ;;  %140 = vrot.lane.b32.xlu1 %v796_v1, %s750_s0  ;;  %v800_v2 = vld [vmem:[#allocation3 + $0x10] sm:$0xff]  ;;  %s752_s2 = smov 72   ;;  %v808_v3 = vld [vmem:[#allocation3 + $0x18] sm:$0xff]  ;;  %s753_s6 = smov 120   ;;  %v755_v4 = vmov 0.0   ;;  %vm433_vm5 = vcmask 588800  }
  0x1c   :  { %s754_s7 = smov 8   ;;  %501 = vmatprep.mubr.f32.mxu0 %v755_v4  ;;  %572 = vmatprep.mubr.f32.mxu1 %v755_v4  ;;  %v69_v6 = vshrl.u32 %v59_v5, 7  ;;  %v822_v7 = vand.u32 127, %v59_v5  ;;  %v366_v12 = vld [vmem:[#allocation6 + $0x20] ss:$8 sm:$0xf] }
  0x1d   :  { %v335_v14 = vld [vmem:[#allocation6 + $0x7] ss:$8 sm:$0xf]  ;;  %v844_v24 = vld [vmem:[#allocation6 + $0x6] ss:$8 sm:$0xf] }
  0x1e   :  { %v824_v8 = vsub.s32 0, %v69_v6  ;;  %v826_v10 = vsub.s32 1, %v69_v6  ;;  %vm148_vm0 = vcmp.lt.s32.totalorder %v822_v7, 56  ;;  %vm104_vm1 = vcmp.lt.s32.totalorder %v822_v7, 64  ;;  %s757_s13 = smov [#allocation8]  }
  0x1f   :  { %144 = vrot.lane.b32.xlu0 %v800_v2, %s750_s0  ;;  %98 = vrot.lane.b32.xlu1 %v794_v0, %s751_s30  ;;  %vm61_vm2 = vcmp.lt.s32.totalorder %v822_v7, 72  ;;  %v859_v32 = vsub.s32 3, %v69_v6  ;;  %v861_v35 = vsub.s32 2, %v69_v6  ;;  %v273_v49 = vld [vmem:[#allocation6 + $0x5] ss:$8 sm:$0xf] }
  0x20   :  { %v375_v13 = vrot.slane %v366_v12, %v826_v10  ;;  %v371_v15 = vrot.slane %v366_v12, %v824_v8  ;;  %v344_v21 = vrot.slane %v335_v14, %v826_v10  ;;  %v340_v22 = vrot.slane %v335_v14, %v824_v8  ;;  %v889_v52 = vld [vmem:[#allocation6 + $0x4] ss:$8 sm:$0xf] }
  0x21   :  { %v313_v31 = vrot.slane %v844_v24, %v826_v10  ;;  %v309_v38 = vrot.slane %v844_v24, %v824_v8  ;;  %v383_v39 = vrot.slane %v366_v12, %v859_v32  ;;  %v379_v40 = vrot.slane %v366_v12, %v861_v35 }
  0x22   :  { %v348_v47 = vrot.slane %v335_v14, %v861_v35  ;;  %v352_v48 = vrot.slane %v335_v14, %v859_v32  ;;  %vm267_vm3 = vcmp.lt.s32.totalorder %v822_v7, 120  ;;  %v282_v57 = vrot.slane %v273_v49, %v826_v10  ;;  %v198_v14 = vld [vmem:[#allocation6 + $0x3] ss:$8 sm:$0xf] }
  0x23   :  { %100 = vrot.lane.b32.xlu0 %v800_v2, %s751_s30  ;;  %96 = vrot.lane.b32.xlu1 %v796_v1, %s751_s30  ;;  %v278_v60 = vrot.slane %v273_v49, %v824_v8  ;;  %v238_v61 = vrot.slane %v889_v52, %v826_v10  ;;  %v234_v62 = vrot.slane %v889_v52, %v824_v8  ;;  %vm192_vm4 = vcmp.lt.s32.totalorder %v822_v7, 8 }
  0x27   :  { %53 = vrot.lane.b32.xlu0 %v794_v0, %s752_s2  ;;  %55 = vrot.lane.b32.xlu1 %v800_v2, %s752_s2 }
  0x2b   :  { %146 = vrot.lane.b32.xlu0 %v808_v3, %s750_s0  ;;  %51 = vrot.lane.b32.xlu1 %v796_v1, %s752_s2 }
  0x2f   :  { %102 = vrot.lane.b32.xlu0 %v808_v3, %s751_s30  ;;  %261 = vrot.lane.b32.xlu1 %v794_v0, %s753_s6 }
  0x33   :  { %263 = vrot.lane.b32.xlu0 %v800_v2, %s753_s6  ;;  %259 = vrot.lane.b32.xlu1 %v796_v1, %s753_s6 }
  0x37   :  { %57 = vrot.lane.b32.xlu0 %v808_v3, %s752_s2  ;;  %184 = vrot.lane.b32.xlu1 %v796_v1, %s754_s7 }
  0x3b   :  { %186 = vrot.lane.b32.xlu0 %v794_v0, %s754_s7  ;;  %265 = vrot.lane.b32.xlu1 %v808_v3, %s753_s6 }
  0x3f   :  { %190 = vrot.lane.b32.xlu0 %v808_v3, %s754_s7  ;;  %188 = vrot.lane.b32.xlu1 %v800_v2, %s754_s7 }
  0x8d   :  { %v143_v9 = vpop.permute.xlu0 %142  ;;  %v141_v11 = vpop.permute.xlu1 %140 }
  0x8e   :  { %v833_v16 = vsel %vm148_vm0, %v141_v11, %v143_v9 }
  0x8f   :  { %v388_v23 = vmul.f32 %v371_v15, %v833_v16  ;;  %v252_v15 = vmul.f32 %v238_v61, %v794_v0  ;;  %v286_v0 = vrot.slane %v273_v49, %v861_v35 }
  0x91   :  { %v145_v17 = vpop.permute.xlu0 %144  ;;  %v99_v18 = vpop.permute.xlu1 %98 }
  0x92   :  { %v837_v19 = vsel %vm148_vm0, %v143_v9, %v145_v17  ;;  %v317_v9 = vrot.slane %v844_v24, %v861_v35 }
  0x93   :  { %v389_v20 = vmul.f32 %v375_v13, %v837_v19  ;;  %v321_v13 = vrot.slane %v844_v24, %v859_v32 }
  0x95   :  { %451 = vmatprep.subr.mxu0 %v389_v20  ;;  %v101_v25 = vpop.permute.xlu0 %100  ;;  %v97_v26 = vpop.permute.xlu1 %96 }
  0x96   :  { %v848_v27 = vsel %vm104_vm1, %v99_v18, %v101_v25  ;;  %v852_v28 = vsel %vm104_vm1, %v97_v26, %v99_v18  ;;  %452 = vmatpush1.msra.mxu0 %v388_v23  ;;  %v207_v23 = vrot.slane %v198_v14, %v826_v10 }
  0x97   :  { %v358_v29 = vmul.f32 %v344_v21, %v848_v27  ;;  %v357_v30 = vmul.f32 %v340_v22, %v852_v28 }
  0x99   :  { %v54_v33 = vpop.permute.xlu0 %53  ;;  %453 = vmatprep.subr.mxu0 %v358_v29  ;;  %v56_v34 = vpop.permute.xlu1 %55  ;;  %v242_v29 = vrot.slane %v889_v52, %v861_v35 }
  0x9a   :  { %v865_v36 = vsel %vm61_vm2, %v54_v33, %v56_v34  ;;  %454 = vmatpush1.msra.mxu0 %v357_v30  ;;  %v154_v30 = vld [vmem:[#allocation6 + $0x2] ss:$8 sm:$0xf] }
  0x9b   :  { %v327_v37 = vmul.f32 %v313_v31, %v865_v36 }
  0x9d   :  { %v147_v41 = vpop.permute.xlu0 %146  ;;  %455 = vmatprep.subr.mxu0 %v327_v37  ;;  %v52_v42 = vpop.permute.xlu1 %51  ;;  %v211_v37 = vrot.slane %v198_v14, %v861_v35 }
  0x9e   :  { %v874_v43 = vsel %vm148_vm0, %v145_v17, %v147_v41  ;;  %v878_v44 = vsel %vm61_vm2, %v52_v42, %v54_v33  ;;  %v882_v45 = vsel %vm148_vm0, %v147_v41, %v141_v11  ;;  %v251_v17 = vmul.f32 %v234_v62, %v796_v1  ;;  %v66_v62 = vld [vmem:[#allocation6] ss:$8 sm:$0xf] }
  0x9f   :  { %v326_v46 = vmul.f32 %v309_v38, %v878_v44  ;;  %v391_v50 = vmul.f32 %v383_v39, %v882_v45  ;;  %v390_v51 = vmul.f32 %v379_v40, %v874_v43  ;;  %v110_v38 = vld [vmem:[#allocation6 + $0x1] ss:$8 sm:$0xf] }
  0xa1   :  { %v103_v53 = vpop.permute.xlu0 %102  ;;  %456 = vmatpush1.msra.mxu0 %v326_v46  ;;  %v262_v54 = vpop.permute.xlu1 %261  ;;  %522 = vmatprep.subr.mxu1 %v391_v50  ;;  %v163_v50 = vrot.slane %v154_v30, %v826_v10 }
  0xa2   :  { %v893_v55 = vsel %vm104_vm1, %v101_v25, %v103_v53  ;;  %v897_v56 = vsel %vm104_vm1, %v103_v53, %v97_v26  ;;  %523 = vmatpush1.msra.mxu1 %v390_v51  ;;  %v290_v25 = vrot.slane %v273_v49, %v859_v32  ;;  %v246_v26 = vrot.slane %v889_v52, %v859_v32 }
  0xa3   :  { %v359_v58 = vmul.f32 %v348_v47, %v893_v55  ;;  %v360_v59 = vmul.f32 %v352_v48, %v897_v56  ;;  %v167_v51 = vrot.slane %v154_v30, %v861_v35  ;;  %v253_v52 = vmul.f32 %v242_v29, %v800_v2 }
  0xa4   :  { %v254_v49 = vmul.f32 %v246_v26, %v808_v3  ;;  %v119_v53 = vrot.slane %v110_v38, %v826_v10 }
  0xa5   :  { %v264_v63 = vpop.permute.xlu0 %263  ;;  %524 = vmatprep.subr.mxu1 %v360_v59  ;;  %v260_v4 = vpop.permute.xlu1 %259 }
  0xa6   :  { %v269_v5 = vsel %vm267_vm3, %v262_v54, %v264_v63  ;;  %v270_v6 = vsel %vm267_vm3, %v260_v4, %v262_v54  ;;  %525 = vmatpush1.msra.mxu1 %v359_v58  ;;  %v171_v54 = vrot.slane %v154_v30, %v859_v32 }
  0xa7   :  { %v296_v11 = vmul.f32 %v282_v57, %v269_v5  ;;  %v295_v12 = vmul.f32 %v278_v60, %v270_v6  ;;  %v159_v57 = vrot.slane %v154_v30, %v824_v8  ;;  %v115_v60 = vrot.slane %v110_v38, %v824_v8 }
  0xa8   :  { %v179_v7 = vmul.f32 %v171_v54, %v874_v43 }
  0xa9   :  { %v58_v18 = vpop.permute.xlu0 %57  ;;  %457 = vmatprep.subr.mxu0 %v296_v11  ;;  %v185_v20 = vpop.permute.xlu1 %184  ;;  %v123_v11 = vrot.slane %v110_v38, %v861_v35 }
  0xaa   :  { %v921_v21 = vsel %vm61_vm2, %v56_v34, %v58_v18  ;;  %v925_v22 = vsel %vm61_vm2, %v58_v18, %v52_v42  ;;  %458 = vmatpush1.msra.mxu0 %v295_v12  ;;  %v203_v34 = vrot.slane %v198_v14, %v824_v8  ;;  %v215_v42 = vrot.slane %v198_v14, %v859_v32 }
  0xab   :  { %v328_v1 = vmul.f32 %v317_v9, %v921_v21  ;;  %v329_v24 = vmul.f32 %v321_v13, %v925_v22  ;;  %459 = vmatprep.subr.mxu0 %v252_v15  ;;  %v177_v9 = vmul.f32 %v163_v50, %v833_v16  ;;  %v75_v12 = vrot.slane %v66_v62, %v826_v10 }
  0xac   :  { %460 = vmatpush1.msra.mxu0 %v251_v17  ;;  %v71_v13 = vrot.slane %v66_v62, %v824_v8  ;;  %v176_v14 = vmul.f32 %v159_v57, %v882_v45  ;;  %v83_v15 = vrot.slane %v66_v62, %v859_v32  ;;  %v178_v17 = vmul.f32 %v167_v51, %v837_v19 }
  0xad   :  { %v187_v31 = vpop.permute.xlu0 %186  ;;  %526 = vmatprep.subr.mxu1 %v329_v24  ;;  %v266_v33 = vpop.permute.xlu1 %265  ;;  %v133_v18 = vmul.f32 %v119_v53, %v852_v28  ;;  %v79_v16 = vrot.slane %v66_v62, %v861_v35  ;;  %v132_v10 = vmul.f32 %v115_v60, %v897_v56  ;;  %v134_v43 = vmul.f32 %v123_v11, %v848_v27  ;;  %v396_v35 = vld [vmem:[%s990_s1] sm:$0xff] }
  0xae   :  { %v195_v39 = vsel %vm192_vm4, %v185_v20, %v187_v31  ;;  %v268_v40 = vsel %vm267_vm3, %v264_v63, %v266_v33  ;;  %v271_v41 = vsel %vm267_vm3, %v266_v33, %v260_v4  ;;  %527 = vmatpush1.msra.mxu1 %v328_v1  ;;  %v127_v63 = vrot.slane %v110_v38, %v859_v32  ;;  %v628_v60 = vld [vmem:[%s993_s4] sm:$0xff]  ;;  %s652_s4 = sshll.u32 %s757_s13, 4  ;;  %s653_s4 = int_to_ptr.vmem [resolvable:$true] %s652_s4 }
  0xaf   :  { %v221_v46 = vmul.f32 %v207_v23, %v195_v39  ;;  %v297_v47 = vmul.f32 %v286_v0, %v268_v40  ;;  %v298_v48 = vmul.f32 %v290_v25, %v271_v41  ;;  %v89_v32 = vmul.f32 %v75_v12, %v878_v44  ;;  %v615_v62 = vld [vmem:[%s992_s3] sm:$0xff]  ;;  %s720_s3 = scalar_lea.vmem %s653_s4, 512  ;;  %p725_p11 = scmp.lt.s32.totalorder %s653_s4, %s653_s4 }
  0xb0   :  { %v135_v8 = vmul.f32 %v127_v63, %v893_v55  ;;  %v88_v19 = vmul.f32 %v71_v13, %v925_v22  ;;  %v91_v28 = vmul.f32 %v83_v15, %v921_v21  ;;  %v90_v45 = vmul.f32 %v79_v16, %v865_v36  ;;  %p721_p10 = scmp.ne.s32.totalorder %s653_s4, %s720_s3  ;;  %p726_p12 = scmp.lt.s32.totalorder %s720_s3, %s720_s3 }
  0xb1   :  { %v191_v58 = vpop.permute.xlu0 %190  ;;  %528 = vmatprep.subr.mxu1 %v298_v48  ;;  %v189_v59 = vpop.permute.xlu1 %188  ;;  %461 = vmatprep.subr.mxu0 %v221_v46 }
  0xb2   :  { %v196_v3 = vsel %vm192_vm4, %v191_v58, %v185_v20  ;;  %v193_v61 = vsel %vm192_vm4, %v189_v59, %v191_v58  ;;  %v194_v2 = vsel %vm192_vm4, %v187_v31, %v189_v59  ;;  %529 = vmatpush1.msra.mxu1 %v297_v47  ;;  %v756_v59 = vmov 0   ;;  %p727_p13 = por %p726_p12, %p725_p11 }
  0xb3   :  { %v220_v4 = vmul.f32 %v203_v34, %v196_v3  ;;  %v222_v5 = vmul.f32 %v211_v37, %v194_v2  ;;  %v223_v6 = vmul.f32 %v215_v42, %v193_v61  ;;  %530 = vmatprep.subr.mxu1 %v254_v49  ;;  %676 = vset.pattern.permute.xlu0 %v756_v59 }
  0xb4   :  { %531 = vmatpush1.msra.mxu1 %v253_v52  ;;  %677 = vset.pattern.permute.xlu1 %v756_v59  ;;  %p728_p0 = pnand %p727_p13, %p721_p10 }
  0xb5   :  { %462 = vmatpush1.msra.mxu0 %v220_v4  ;;  %532 = vmatprep.subr.mxu1 %v223_v6 }
  0xb6   :  { %463 = vmatprep.subr.mxu0 %v177_v9  ;;  %533 = vmatpush1.msra.mxu1 %v222_v5 }
  0xb7   :  { %464 = vmatpush1.msra.mxu0 %v176_v14  ;;  %534 = vmatprep.subr.mxu1 %v179_v7 }
  0xb8   :  { %465 = vmatprep.subr.mxu0 %v133_v18  ;;  %535 = vmatpush1.msra.mxu1 %v178_v17 }
  0xb9   :  { %466 = vmatpush1.msra.mxu0 %v132_v10  ;;  %536 = vmatprep.subr.mxu1 %v135_v8 }
  0xba   :  { %467 = vmatprep.subr.mxu0 %v89_v32  ;;  %537 = vmatpush1.msra.mxu1 %v134_v43 }
  0xbb   :  { %468 = vmatpush1.msra.mxu0 %v88_v19  ;;  %538 = vmatprep.subr.mxu1 %v91_v28 }
  0xbc   :  { %662 = vmatmul.mubr.msk.f32.vlgmr.msra.gmra.mxu0 %vm433_vm5, %v396_v35  ;;  %539 = vmatpush1.msra.mxu1 %v90_v45 }
  0xbd   :  { %663 = vmatmul.mubr.msk.f32.vlgmr.msra.gmra.mxu1 %vm433_vm5, %v396_v35 }
 0x17c   :  { %v503_v27 = vpop.f32.mrf.mxu0 }
 0x17d   :  { %v579_v44 = vrot.slane %v503_v27, 4  ;;  %v574_v55 = vpop.f32.mrf.mxu1 }
 0x17e   :  { %v505_v56 = vpop.f32.mrf.mxu0  ;;  %v581_v20 = vrot.slane %v574_v55, 4 }
 0x17f   :  { %v580_v21 = vrot.slane %v505_v56, 4  ;;  %v576_v22 = vpop.f32.mrf.mxu1  ;;  %v583_v23 = vadd.f32 %v579_v44, %v503_v27 }
 0x180   :  { %v582_v1 = vrot.slane %v576_v22, 4  ;;  %v585_v24 = vadd.f32 %v581_v20, %v574_v55 }
 0x181   :  { %v584_v0 = vadd.f32 %v580_v21, %v505_v56 }
 0x182   :  { %v586_v36 = vadd.f32 %v582_v1, %v576_v22 }
 0x183   :  { %v587_v25 = vadd.f32 %v584_v0, %v583_v23 }
 0x185   :  { %v588_v26 = vadd.f32 %v587_v25, %v585_v24 }
 0x187   :  { %v589_v29 = vadd.f32 %v588_v26, %v586_v36 }
 0x189   :  { %590 = vadd.xlane.f32.xlu0 %v589_v29 }
 0x212   :  { %v591_v30 = vpop.xlane.xlu0 %590 }
 0x213   :  { %v592_v31 = vmul.f32 0.0009765625, %v591_v30 }
 0x215   :  { %v593_v33 = vsub.f32 %v503_v27, %v592_v31  ;;  %v594_v34 = vsub.f32 %v505_v56, %v592_v31  ;;  %v595_v37 = vsub.f32 %v574_v55, %v592_v31  ;;  %v596_v38 = vsub.f32 %v576_v22, %v592_v31 }
 0x217   :  { %v597_v39 = vmul.f32 %v593_v33, %v593_v33  ;;  %v598_v40 = vmul.f32 %v594_v34, %v594_v34  ;;  %v599_v41 = vmul.f32 %v595_v37, %v595_v37  ;;  %v600_v42 = vmul.f32 %v596_v38, %v596_v38 }
 0x219   :  { %v601_v46 = vrot.slane %v597_v39, 4  ;;  %v602_v47 = vrot.slane %v598_v40, 4  ;;  %v603_v48 = vrot.slane %v599_v41, 4  ;;  %v604_v49 = vrot.slane %v600_v42, 4 }
 0x21b   :  { %v605_v50 = vadd.f32 %v601_v46, %v597_v39  ;;  %v606_v51 = vadd.f32 %v602_v47, %v598_v40  ;;  %v607_v52 = vadd.f32 %v603_v48, %v599_v41  ;;  %v608_v54 = vadd.f32 %v604_v49, %v600_v42 }
 0x21d   :  { %v609_v53 = vadd.f32 %v606_v51, %v605_v50 }
 0x21f   :  { %v610_v57 = vadd.f32 %v609_v53, %v607_v52 }
 0x221   :  { %v611_v58 = vadd.f32 %v610_v57, %v608_v54 }
 0x223   :  { %612 = vadd.xlane.f32.xlu1 %v611_v58 }
 0x234   :  { %631 = vperm.xlu1 %677, %v628_v60  }
 0x2ac   :  { %v613_v3 = vpop.xlane.xlu1 %612 }
 0x2ad   :  { %v614_v61 = vmul.f32 0.0009765625, %v613_v3 }
 0x2af   :  { %v616_v2 = vadd.f32 1e-05, %v614_v61 }
 0x2b0   :  { %v632_v6 = vpop.permute.xlu1 %631 }
 0x2b1   :  { %678 = vrsqrt.f32 %v616_v2 }
 0x2be   :  { %v679_v63 = vpop.eup %678 }
 0x2bf   :  { %v618_v4 = vmul.f32 %v679_v63, %v615_v62 }
 0x2c1   :  { %621 = vperm.xlu0 %676, %v618_v4  }
 0x33c   :  { %v622_v5 = vpop.permute.xlu0 %621 }
 0x33d   :  { %v624_v9 = vmul.f32 %v622_v5, %v593_v33  ;;  %v625_v11 = vmul.f32 %v622_v5, %v594_v34  ;;  %v626_v12 = vmul.f32 %v622_v5, %v595_v37  ;;  %v627_v13 = vmul.f32 %v622_v5, %v596_v38 }
 0x33f   :  { %v634_v7 = vadd.f32 %v632_v6, %v624_v9  ;;  %v635_v14 = vadd.f32 %v632_v6, %v625_v11  ;;  %v636_v15 = vadd.f32 %v632_v6, %v626_v12  ;;  %v637_v17 = vadd.f32 %v632_v6, %v627_v13 }
 0x341   :  { %v638_v18 = vmax.f32 %v634_v7, 0.0  ;;  %v639_v16 = vmax.f32 %v635_v14, 0.0  ;;  %v640_v10 = vmax.f32 %v636_v15, 0.0  ;;  %v641_v8 = vmax.f32 %v637_v17, 0.0 }
 0x343   :  { %642 = vst [vmem:[#allocation8] sm:$0xff] %v638_v18  ;;  %643 = vst [vmem:[#allocation8 + $0x8] sm:$0xff] %v639_v16 }
 0x344   :  { %644 = vst [vmem:[#allocation8 + $0x10] sm:$0xff] %v640_v10  ;;  %645 = vst [vmem:[#allocation8 + $0x18] sm:$0xff] %v641_v8 }
 0x345   :  { %731 = shalt.err (!%p728_p0)
}
 0x346   :  { %655 = dma.vmem_to_hbm [thread:$0]  %s653_s4, 512, %s994_s5, [#allocation5]  }
 0x347   :  { %744 = dma.done.wait [#allocation5], 512  }
 0x348   :  { %745 = vsyncadd [#allocation5], 4294966784 }
 0x349   :  { %659 = vsyncpa [#allocation4], 1 }
 0x34a   :  { %660 = vsyncpa [#allocation7], 1 }
 0x34b   :  { %661 = vsyncpa [#allocation5], 1 }

</bundles_post_ra>
